<compile_context>
chip_gen: v6e
topology: v6e:2x2x1
jax: 0.10.0
libtpu: 0.0.40
codegen_flags: <defaults>
</compile_context>

<pallas_src>
import functools

import numpy as np
import jax
import jax.numpy as jnp
from jax import lax
from jax.experimental import pallas as pl
from jax.experimental.pallas import tpu as pltpu

_EPS = 1e-6                              # torch F.pairwise_distance default eps
_TARGET_BLOCK_BYTES = 4 * 1024 * 1024    # ~4 MiB per input block (~85%+ of HBM roofline)


def _sublane_multiple(itemsize):
    return {4: 8, 2: 16, 1: 32}.get(itemsize, 8)


def _pick_tile_rows(r_total, w, itemsize):
    """Rows per block so each input block is ~4 MiB (3 inputs x 2 buffers <= ~24 MiB)."""
    sub = _sublane_multiple(itemsize)
    bytes_per_row = max(w, 1) * itemsize
    rows = _TARGET_BLOCK_BYTES // bytes_per_row
    rows = max(sub, (rows // sub) * sub)
    if rows >= r_total:
        return int(r_total)              # single block == full array shape: always legal
    return int(rows)


def _detect_core_slots():
    """2 when the chip exposes two TensorCores to one Pallas program (v7x, v4/v5p)."""
    try:
        dev = jax.devices()[0]
        for attr in ("num_cores", "core_count", "num_tensorcores"):
            v = getattr(dev, attr, None)
            if isinstance(v, (int, np.integer)) and int(v) >= 1:
                return int(min(int(v), 2))
        kind = str(getattr(dev, "device_kind", "")).lower()
        if any(t in kind for t in ("v7", "7x", "v4", "v5p")):
            return 2
    except Exception:
        pass
    return 1


def _pair_distances(g_ref, a_ref, p_ref, n_ref, swap):
    """Per-row (or per packed group) L2 distances; feature reduce on the MXU."""
    G = g_ref[...]                                   # (W, cols) f32, resident (const index_map)
    a = a_ref[...].astype(jnp.float32)
    p = p_ref[...].astype(jnp.float32)
    n = n_ref[...].astype(jnp.float32)

    def dist(x, y):
        diff = x - y + _EPS
        sq = lax.dot_general(diff * diff, G, (((1,), (0,)), ((), ())),
                             preferred_element_type=jnp.float32)   # (tile_rows, cols)
        return jnp.sqrt(sq)

    d_pos = dist(a, p)
    d_neg = dist(a, n)
    if swap:
        d_neg = jnp.minimum(d_neg, dist(p, n))
    return d_pos, d_neg


def _none_kernel(g_ref, a_ref, p_ref, n_ref, out_ref, *, margin, swap):
    d_pos, d_neg = _pair_distances(g_ref, a_ref, p_ref, n_ref, swap)
    out_ref[...] = jnp.maximum(d_pos - d_neg + margin, 0.0).astype(out_ref.dtype)


def _reduce_kernel(g_ref, a_ref, p_ref, n_ref, out_ref, *, margin, swap,
                   valid_rows, tile_rows, tiles_per_core):
    c = pl.program_id(0)          # core slot ("parallel")
    j = pl.program_id(1)          # tiles within the slot ("arbitrary" reduction axis)

    @pl.when(j == 0)
    def _():
        out_ref[...] = jnp.zeros_like(out_ref)       # resident per-slot f32 accumulator

    d_pos, d_neg = _pair_distances(g_ref, a_ref, p_ref, n_ref, swap)
    losses = jnp.maximum(d_pos - d_neg + margin, 0.0)
    # Mask rows of partial / clamped-duplicate tiles.  jnp.where does not propagate
    # NaN/Inf from the masked branch, so garbage in padded input rows is harmless.
    row0 = (c * tiles_per_core + j) * tile_rows
    rows = row0 + lax.broadcasted_iota(jnp.int32, losses.shape, 0)
    out_ref[...] += jnp.where(rows < valid_rows, losses, 0.0)


def triplet_margin_with_distance_loss(anchor, positive, negative, *, margin=1.0,
                                      swap=False, reduction="mean",
                                      tile_rows=None, core_slots=None, interpret=False):
    """Pallas-TPU CustomTripletMarginWithDistanceLoss.forward (default L2 distance).

    tile_rows (optional, testing): row-tile override; must be a multiple of 8
    (16 for bf16) when it does not cover the whole (packed) batch.
    core_slots (optional): number of parallel core slots for mean/sum (1 or 2).
    """
    assert anchor.shape == positive.shape == negative.shape
    assert anchor.ndim == 2, "expected (N, D) embeddings"
    if reduction not in ("mean", "sum", "none"):
        raise ValueError(f"unsupported reduction: {reduction!r}")
    n_rows, d = anchor.shape
    assert n_rows > 0 and d > 0
    orig_dtype = anchor.dtype
    itemsize = jnp.dtype(orig_dtype).itemsize

    # ---- lane packing for narrow features: (N, D) -> (N*D/128, 128) is a free reshape.
    grp = 1
    if 0 < d < 128 and 128 % d == 0 and (n_rows * d) % 128 == 0 and n_rows * d >= 128:
        grp = 128 // d
    if grp > 1:
        w, r_total = 128, (n_rows * d) // 128
        a2 = anchor.reshape(r_total, 128)
        p2 = positive.reshape(r_total, 128)
        n2 = negative.reshape(r_total, 128)
        # Block-diagonal group matrix: column c sums the D lanes of packed sub-row c.
        G = (np.arange(128)[:, None] // d == np.arange(grp)[None, :]).astype(np.float32)
    else:
        w, r_total = d, n_rows
        a2, p2, n2 = anchor, positive, negative
        G = np.ones((d, 1), np.float32)               # plain feature-axis reduce on the MXU
    cols = G.shape[1]
    g_arr = jnp.asarray(G)

    if tile_rows is None:
        tile_rows = _pick_tile_rows(r_total, w, itemsize)
    tile_rows = int(tile_rows)
    num_tiles = int(pl.cdiv(r_total, tile_rows))

    block_bytes = tile_rows * w * itemsize
    vmem_limit = int(max(32 * 1024 * 1024,
                         6 * block_bytes + 2 * tile_rows * cols * 4 + (2 << 20)))

    if reduction == "none":
        in_spec = pl.BlockSpec((tile_rows, w), lambda i: (i, 0))
        g_spec = pl.BlockSpec((w, cols), lambda i: (0, 0))
        out_spec = pl.BlockSpec((tile_rows, cols), lambda i: (i, 0))
        out_shape = jax.ShapeDtypeStruct((num_tiles * tile_rows, cols), orig_dtype)
        kernel = functools.partial(_none_kernel, margin=float(margin), swap=bool(swap))
        out = pl.pallas_call(
            kernel,
            out_shape=out_shape,
            grid_spec=pltpu.PrefetchScalarGridSpec(
                num_scalar_prefetch=0, grid=(num_tiles,),
                in_specs=[g_spec, in_spec, in_spec, in_spec],
                out_specs=out_spec),
            compiler_params=pltpu.CompilerParams(
                dimension_semantics=("parallel",),
                vmem_limit_bytes=vmem_limit),
            interpret=interpret,
        )(g_arr, a2, p2, n2)
        # Row-major flatten restores the original row order (packed and unpacked).
        return out.reshape(-1)[:n_rows]

    # ---- reduction in ('mean', 'sum')
    if core_slots is None:
        core_slots = _detect_core_slots()
    core_slots = max(1, min(2, int(core_slots)))
    if num_tiles < 2:
        core_slots = 1
    tpc = int(pl.cdiv(num_tiles, core_slots))

    def in_map(c, j):
        # Clamp the (rare) trailing duplicate tile of the last core slot; its rows are
        # masked to zero inside the kernel so it contributes nothing.
        return (jnp.minimum(c * tpc + j, num_tiles - 1), 0)

    in_spec = pl.BlockSpec((tile_rows, w), in_map)
    g_spec = pl.BlockSpec((w, cols), lambda c, j: (0, 0))
    out_spec = pl.BlockSpec((tile_rows, cols), lambda c, j: (c, 0))
    out_shape = jax.ShapeDtypeStruct((core_slots * tile_rows, cols), jnp.float32)

    kernel = functools.partial(_reduce_kernel, margin=float(margin), swap=bool(swap),
                               valid_rows=int(r_total), tile_rows=tile_rows,
                               tiles_per_core=tpc)
    out = pl.pallas_call(
        kernel,
        out_shape=out_shape,
        grid_spec=pltpu.PrefetchScalarGridSpec(
            num_scalar_prefetch=0, grid=(core_slots, tpc),
            in_specs=[g_spec, in_spec, in_spec, in_spec],
            out_specs=out_spec),
        compiler_params=pltpu.CompilerParams(
            dimension_semantics=("parallel", "arbitrary"),
            vmem_limit_bytes=vmem_limit),
        interpret=interpret,
    )(g_arr, a2, p2, n2)

    total = jnp.sum(out)             # tiny final reduce over the per-slot partial sums
    if reduction == "mean":
        total = total / n_rows       # true divide (matches torch .mean())
    return total.astype(orig_dtype)


if __name__ == "__main__":
    key = jax.random.PRNGKey(0)
    k_a, k_p, k_n = jax.random.split(key, 3)

    # pure-JAX reference (computed in f32)
    def ref_dist(x, y):
        x = x.astype(jnp.float32)
        y = y.astype(jnp.float32)
        return jnp.sqrt(jnp.sum((x - y + _EPS) ** 2, axis=-1))

    def ref_loss(a, p, n, margin=1.0, swap=False, reduction="mean"):
        dp = ref_dist(a, p)
        dn = ref_dist(a, n)
        if swap:
            dn = jnp.minimum(dn, ref_dist(p, n))
        l = jnp.maximum(dp - dn + margin, 0.0)
        if reduction == "mean":
            return jnp.mean(l)
        if reduction == "sum":
            return jnp.sum(l)
        return l

    def run(a, p, n, **cfg):
        fn = jax.jit(functools.partial(triplet_margin_with_distance_loss, **cfg))
        return jax.block_until_ready(fn(a, p, n))

    # small batch of embeddings: N=16, D=32 (lane-packed path, single tile)
    N, D = 16, 32
    anchor = jax.random.normal(k_a, (N, D), dtype=jnp.float32)
    positive = jax.random.normal(k_p, (N, D), dtype=jnp.float32)
    negative = jax.random.normal(k_n, (N, D), dtype=jnp.float32)

    for cfg in (dict(margin=1.0, swap=False, reduction="mean"),
                dict(margin=0.5, swap=True, reduction="sum"),
                dict(margin=1.0, swap=False, reduction="none")):
        got = run(anchor, positive, negative, **cfg)
        want = ref_loss(anchor, positive, negative, **cfg)
        assert jnp.allclose(got, want, rtol=1e-5, atol=1e-5), (cfg, got, want)

    # multi-tile, partial last tile, clamped duplicate tile, explicit 2-core-slot split
    N2, D2 = 300, 32
    a2 = jax.random.normal(k_a, (N2, D2), dtype=jnp.float32)
    p2 = jax.random.normal(k_p, (N2, D2), dtype=jnp.float32)
    n2 = jax.random.normal(k_n, (N2, D2), dtype=jnp.float32)
    for red in ("mean", "sum", "none"):
        for slots in (1, 2):
            sw = red == "sum"
            got = run(a2, p2, n2, reduction=red, swap=sw, tile_rows=16, core_slots=slots)
            want = ref_loss(a2, p2, n2, reduction=red, swap=sw)
            assert jnp.allclose(got, want, rtol=1e-5, atol=1e-5), (red, slots, got, want)

    # un-packable feature width (128 % 48 != 0) exercises the generic path
    N3, D3 = 100, 48
    a3 = jax.random.normal(k_a, (N3, D3), dtype=jnp.float32)
    p3 = jax.random.normal(k_p, (N3, D3), dtype=jnp.float32)
    n3 = jax.random.normal(k_n, (N3, D3), dtype=jnp.float32)
    for red in ("mean", "none"):
        got = run(a3, p3, n3, reduction=red, tile_rows=32, core_slots=2)
        want = ref_loss(a3, p3, n3, reduction=red)
        assert jnp.allclose(got, want, rtol=1e-5, atol=1e-5), (red, got, want)

    # bf16 smoke test (output keeps input dtype; looser tolerance)
    ab = anchor.astype(jnp.bfloat16)
    pb = positive.astype(jnp.bfloat16)
    nb = negative.astype(jnp.bfloat16)
    for red in ("mean", "none"):
        got = run(ab, pb, nb, reduction=red).astype(jnp.float32)
        want = ref_loss(ab, pb, nb, reduction=red)
        assert jnp.allclose(got, want, rtol=2e-2, atol=2e-2), (red, got, want)

    print("KERNEL_OK")
</pallas_src>

<mosaic_0001>
module attributes {stable_mosaic.version = 11 : i64} {
  func.func @_reduce_kernel(%arg0: i32, %arg1: i32, %arg2: memref<128x4xf32, #tpu.memory_space<vmem>>, %arg3: memref<4x128xf32, #tpu.memory_space<vmem>>, %arg4: memref<4x128xf32, #tpu.memory_space<vmem>>, %arg5: memref<4x128xf32, #tpu.memory_space<vmem>>, %arg6: memref<4x4xf32, #tpu.memory_space<vmem>>) attributes {dimension_semantics = [#tpu.dimension_semantics<parallel>, #tpu.dimension_semantics<arbitrary>], iteration_bounds = array<i64: 1, 1>, scalar_prefetch = 0 : i64, scratch_operands = 0 : i64, tpu.core_type = #tpu.core_type<tc>, window_params = [{pipeline_mode = #tpu.pipeline_mode<synchronous>, transform_indices = @transform_0, window_bounds = array<i64: 128, 4>}, {transform_indices = @transform_1, window_bounds = array<i64: 4, 128>}, {transform_indices = @transform_2, window_bounds = array<i64: 4, 128>}, {transform_indices = @transform_3, window_bounds = array<i64: 4, 128>}, {transform_indices = @transform_4, window_bounds = array<i64: 4, 4>}]} {
    %c0_i32 = arith.constant 0 : i32
    %0 = arith.cmpi eq, %arg1, %c0_i32 : i32
    %1 = arith.extui %0 : i1 to i32
    %c0_i32_0 = arith.constant 0 : i32
    %2 = arith.cmpi ne, %1, %c0_i32_0 : i32
    scf.if %2 {
      %cst_19 = arith.constant 0.000000e+00 : f32
      %37 = vector.broadcast %cst_19 : f32 to vector<4x4xf32>
      %c0_20 = arith.constant 0 : index
      %c0_21 = arith.constant 0 : index
      %38 = vector.load %arg6[%c0_20, %c0_21] : memref<4x4xf32, #tpu.memory_space<vmem>>, vector<4x4xf32>
      tpu.vector_store %arg6[%c0_20, %c0_21], %37 {strides = array<i32>} : memref<4x4xf32, #tpu.memory_space<vmem>>, vector<4x4xf32>,
    } else {
    }
    %c0 = arith.constant 0 : index
    %c0_1 = arith.constant 0 : index
    %3 = vector.load %arg2[%c0, %c0_1] : memref<128x4xf32, #tpu.memory_space<vmem>>, vector<128x4xf32>
    %c0_2 = arith.constant 0 : index
    %c0_3 = arith.constant 0 : index
    %4 = vector.load %arg3[%c0_2, %c0_3] : memref<4x128xf32, #tpu.memory_space<vmem>>, vector<4x128xf32>
    %c0_4 = arith.constant 0 : index
    %c0_5 = arith.constant 0 : index
    %5 = vector.load %arg4[%c0_4, %c0_5] : memref<4x128xf32, #tpu.memory_space<vmem>>, vector<4x128xf32>
    %c0_6 = arith.constant 0 : index
    %c0_7 = arith.constant 0 : index
    %6 = vector.load %arg5[%c0_6, %c0_7] : memref<4x128xf32, #tpu.memory_space<vmem>>, vector<4x128xf32>
    %7 = arith.subf %4, %5 : vector<4x128xf32>
    %cst = arith.constant 9.99999997E-7 : f32
    %8 = vector.broadcast %cst : f32 to vector<4x128xf32>
    %9 = arith.addf %7, %8 : vector<4x128xf32>
    %10 = arith.mulf %9, %9 : vector<4x128xf32>
    %cst_8 = arith.constant dense<0.000000e+00> : vector<4x4xf32>
    %11 = tpu.matmul %10, %3, %cst_8 {dimension_numbers = #tpu.dot_dimension_numbers<[1], [0], [0], [1], [0, 0, 1, 1], [], []>} : vector<4x128xf32>, vector<128x4xf32>, vector<4x4xf32> -> vector<4x4xf32>
    %12 = math.sqrt %11 : vector<4x4xf32>
    %13 = arith.subf %4, %6 : vector<4x128xf32>
    %cst_9 = arith.constant 9.99999997E-7 : f32
    %14 = vector.broadcast %cst_9 : f32 to vector<4x128xf32>
    %15 = arith.addf %13, %14 : vector<4x128xf32>
    %16 = arith.mulf %15, %15 : vector<4x128xf32>
    %cst_10 = arith.constant dense<0.000000e+00> : vector<4x4xf32>
    %17 = tpu.matmul %16, %3, %cst_10 {dimension_numbers = #tpu.dot_dimension_numbers<[1], [0], [0], [1], [0, 0, 1, 1], [], []>} : vector<4x128xf32>, vector<128x4xf32>, vector<4x4xf32> -> vector<4x4xf32>
    %18 = math.sqrt %17 : vector<4x4xf32>
    %19 = arith.subf %12, %18 : vector<4x4xf32>
    %cst_11 = arith.constant 1.000000e+00 : f32
    %20 = vector.broadcast %cst_11 : f32 to vector<4x4xf32>
    %21 = arith.addf %19, %20 : vector<4x4xf32>
    %cst_12 = arith.constant 0.000000e+00 : f32
    %22 = vector.broadcast %cst_12 : f32 to vector<4x4xf32>
    %23 = arith.maximumf %21, %22 : vector<4x4xf32>
    %c1_i32 = arith.constant 1 : i32
    %24 = arith.muli %arg0, %c1_i32 : i32
    %25 = arith.addi %24, %arg1 : i32
    %c4_i32 = arith.constant 4 : i32
    %26 = arith.muli %25, %c4_i32 : i32
    %27 = tpu.iota {dimensions = array<i32: 0>} : vector<4x4xi32>
    %28 = vector.broadcast %26 : i32 to vector<4x4xi32>
    %29 = arith.addi %28, %27 : vector<4x4xi32>
    %c0_13 = arith.constant 0 : index
    %c0_14 = arith.constant 0 : index
    %30 = vector.load %arg6[%c0_13, %c0_14] : memref<4x4xf32, #tpu.memory_space<vmem>>, vector<4x4xf32>
    %c4_i32_15 = arith.constant 4 : i32
    %31 = vector.broadcast %c4_i32_15 : i32 to vector<4x4xi32>
    %32 = arith.cmpi slt, %29, %31 : vector<4x4xi32>
    %cst_16 = arith.constant 0.000000e+00 : f32
    %33 = vector.broadcast %cst_16 : f32 to vector<4x4xf32>
    %34 = arith.select %32, %23, %33 : vector<4x4xi1>, vector<4x4xf32>
    %35 = arith.addf %30, %34 : vector<4x4xf32>
    %c0_17 = arith.constant 0 : index
    %c0_18 = arith.constant 0 : index
    %36 = vector.load %arg6[%c0_17, %c0_18] : memref<4x4xf32, #tpu.memory_space<vmem>>, vector<4x4xf32>
    tpu.vector_store %arg6[%c0_17, %c0_18], %35 {strides = array<i32>} : memref<4x4xf32, #tpu.memory_space<vmem>>, vector<4x4xf32>,
    return
  }
  func.func @transform_0(%arg0: i32, %arg1: i32) -> (i32, i32) {
    %c0_i32 = arith.constant 0 : i32
    %c0_i32_0 = arith.constant 0 : i32
    %c0_i32_1 = arith.constant 0 : i32
    return %c0_i32, %c0_i32_0 : i32, i32
  }
  func.func @transform_1(%arg0: i32, %arg1: i32) -> (i32, i32) {
    %c1_i32 = arith.constant 1 : i32
    %0 = arith.muli %arg0, %c1_i32 : i32
    %1 = arith.addi %0, %arg1 : i32
    %c0_i32 = arith.constant 0 : i32
    %2 = arith.minsi %1, %c0_i32 : i32
    %c0_i32_0 = arith.constant 0 : i32
    %c0_i32_1 = arith.constant 0 : i32
    return %2, %c0_i32_0 : i32, i32
  }
  func.func @transform_2(%arg0: i32, %arg1: i32) -> (i32, i32) {
    %c1_i32 = arith.constant 1 : i32
    %0 = arith.muli %arg0, %c1_i32 : i32
    %1 = arith.addi %0, %arg1 : i32
    %c0_i32 = arith.constant 0 : i32
    %2 = arith.minsi %1, %c0_i32 : i32
    %c0_i32_0 = arith.constant 0 : i32
    %c0_i32_1 = arith.constant 0 : i32
    return %2, %c0_i32_0 : i32, i32
  }
  func.func @transform_3(%arg0: i32, %arg1: i32) -> (i32, i32) {
    %c1_i32 = arith.constant 1 : i32
    %0 = arith.muli %arg0, %c1_i32 : i32
    %1 = arith.addi %0, %arg1 : i32
    %c0_i32 = arith.constant 0 : i32
    %2 = arith.minsi %1, %c0_i32 : i32
    %c0_i32_0 = arith.constant 0 : i32
    %c0_i32_1 = arith.constant 0 : i32
    return %2, %c0_i32_0 : i32, i32
  }
  func.func @transform_4(%arg0: i32, %arg1: i32) -> (i32, i32) {
    %c0_i32 = arith.constant 0 : i32
    %c0_i32_0 = arith.constant 0 : i32
    return %arg0, %c0_i32 : i32, i32
  }
}

</mosaic_0001>

<bundles_post_ra>
// kernel: triplet_margin_with_distance_loss.1
= control target key start
LH: loop header
LB: loop body
LE: loop exit
PB: predicated region body
PF: predicated region fallthrough
CT: control target
= control target key end

     0   :  { %9 = vsyncpa [#allocation3], 0  ;;  %s470_s15 = smov [#allocation2]   ;;  %s558_s0 = inlined_call_operand.hbm [shape: f32[128,4], index: 0, kind: input, shape index: {}]   ;;  %s559_s1 = inlined_call_operand.vmem [shape: f32[4,128], index: 1, kind: input, shape index: {}]   ;;  %s560_s2 = inlined_call_operand.vmem [shape: f32[4,128], index: 2, kind: input, shape index: {}]   ;;  %s561_s3 = inlined_call_operand.vmem [shape: f32[4,128], index: 3, kind: input, shape index: {}]   ;;  %s562_s4 = inlined_call_operand.vmem [shape: f32[4,4], index: 4, kind: output, shape index: {}]  }
   0x1   :  { %s15_s16 = sshll.u32 %s470_s15, 4  ;;  %s16_s16 = int_to_ptr.vmem [resolvable:$true] %s15_s16 }
   0x2   :  { %s456_s17 = scalar_lea.vmem %s16_s16, 2048  ;;  %p461_p1 = scmp.lt.s32.totalorder %s16_s16, %s16_s16 }
   0x3   :  { %p457_p0 = scmp.ne.s32.totalorder %s16_s16, %s456_s17  ;;  %p462_p2 = scmp.lt.s32.totalorder %s456_s17, %s456_s17 }
   0x5   :  { %p463_p3 = por %p462_p2, %p461_p1 }
   0x7   :  { %p464_p4 = pnand %p463_p3, %p457_p0 }
   0x9   :  { %467 = shalt.err (!%p464_p4)
}
   0xa   :  { %s471_s18 = smov 128   ;;  %s472_s19 = smov 8  }
   0xb   :  { %21 = dma.hbm_to_vmem [thread:$0]  %s558_s0, 2048, %s16_s16, [#allocation3], %s471_s18, %s471_s18, %s472_s19  }
   0xc   :  { %468 = dma.done.wait [#allocation3], 2048  }
   0xd   :  { %469 = vsyncadd [#allocation3], 4294965248  ;;  %v473_v0 = vmov 0.0   ;;  %vm474_vm0 = vmmov 0   ;;  %v133_v1 = vld [vmem:[#allocation2 + $0x78] sm:$0xff]  ;;  %v132_v2 = vld [vmem:[#allocation2 + $0x70] sm:$0xff]  ;;  %v302_v33 = vlaneseq }
   0xe   :  { %369 = vmatprep.subr.mxu0 %v473_v0  ;;  %404 = vmatprep.subr.mxu1 %v473_v0  ;;  %v131_v3 = vld [vmem:[#allocation2 + $0x68] sm:$0xff]  ;;  %v130_v4 = vld [vmem:[#allocation2 + $0x60] sm:$0xff]  ;;  %v129_v5 = vld [vmem:[#allocation2 + $0x58] sm:$0xff]  ;;  %vm116_vm1 = vcmask 27648  }
   0xf   :  { %401 = vmatprep.mubr.msk.f32.mxu0 %vm474_vm0, %v473_v0  ;;  %436 = vmatprep.mubr.msk.f32.mxu1 %vm474_vm0, %v473_v0  ;;  %v128_v6 = vld [vmem:[#allocation2 + $0x50] sm:$0xff]  ;;  %v127_v7 = vld [vmem:[#allocation2 + $0x48] sm:$0xff]  ;;  %v126_v8 = vld [vmem:[#allocation2 + $0x40] sm:$0xff]  ;;  %117 = vst.msk [vmem:[%s562_s4] sm:$0xf] %vm116_vm1, %v473_v0  ;;  %v303_v41 = vshrl.u32 %v302_v33, 7 }
  0x10   :  { %370 = vmatpush3.msra.mxu0 %v133_v1  ;;  %405 = vmatpush3.msra.mxu1 %v133_v1  ;;  %v125_v9 = vld [vmem:[#allocation2 + $0x38] sm:$0xff]  ;;  %v124_v10 = vld [vmem:[#allocation2 + $0x30] sm:$0xff]  ;;  %v134_v11 = vld [vmem:[%s559_s1] sm:$0xf] }
  0x11   :  { %371 = vmatprep.subr.mxu0 %v473_v0  ;;  %406 = vmatprep.subr.mxu1 %v473_v0  ;;  %v135_v12 = vld [vmem:[%s560_s2] sm:$0xf]  ;;  %v123_v14 = vld [vmem:[#allocation2 + $0x28] sm:$0xff]  ;;  %v121_v18 = vld [vmem:[#allocation2 + $0x18] sm:$0xff]  ;;  %vm307_vm6 = vcmp.lt.s32.totalorder %v303_v41, 4 }
  0x12   :  { %372 = vmatpush3.msra.mxu0 %v132_v2  ;;  %407 = vmatpush3.msra.mxu1 %v132_v2  ;;  %v136_v13 = vld [vmem:[%s561_s3] sm:$0xf]  ;;  %v137_v16 = vsub.f32 %v134_v11, %v135_v12  ;;  %v120_v19 = vld [vmem:[#allocation2 + $0x10] sm:$0xff]  ;;  %v119_v22 = vld [vmem:[#allocation2 + $0x8] sm:$0xff] }
  0x13   :  { %373 = vmatprep.subr.mxu0 %v473_v0  ;;  %408 = vmatprep.subr.mxu1 %v473_v0  ;;  %v122_v15 = vld [vmem:[#allocation2 + $0x20] sm:$0xff]  ;;  %v217_v17 = vsub.f32 %v134_v11, %v136_v13 }
  0x14   :  { %374 = vmatpush3.msra.mxu0 %v131_v3  ;;  %409 = vmatpush3.msra.mxu1 %v131_v3  ;;  %v138_v20 = vadd.f32 1e-06, %v137_v16  ;;  %v118_v23 = vld [vmem:[#allocation2] sm:$0xff] }
  0x15   :  { %375 = vmatprep.subr.mxu0 %v473_v0  ;;  %410 = vmatprep.subr.mxu1 %v473_v0  ;;  %v218_v21 = vadd.f32 1e-06, %v217_v17 }
  0x16   :  { %376 = vmatpush3.msra.mxu0 %v130_v4  ;;  %411 = vmatpush3.msra.mxu1 %v130_v4  ;;  %v139_v24 = vmul.f32 %v138_v20, %v138_v20  ;;  %v306_v45 = vld [vmem:[%s562_s4] sm:$0xf] }
  0x17   :  { %377 = vmatprep.subr.mxu0 %v473_v0  ;;  %412 = vmatprep.subr.mxu1 %v473_v0  ;;  %v219_v25 = vmul.f32 %v218_v21, %v218_v21 }
  0x18   :  { %378 = vmatpush3.msra.mxu0 %v129_v5  ;;  %413 = vmatpush3.msra.mxu1 %v129_v5 }
  0x19   :  { %379 = vmatprep.subr.mxu0 %v473_v0  ;;  %414 = vmatprep.subr.mxu1 %v473_v0 }
  0x1a   :  { %380 = vmatpush3.msra.mxu0 %v128_v6  ;;  %415 = vmatpush3.msra.mxu1 %v128_v6 }
  0x1b   :  { %381 = vmatprep.subr.mxu0 %v473_v0  ;;  %416 = vmatprep.subr.mxu1 %v473_v0 }
  0x1c   :  { %382 = vmatpush3.msra.mxu0 %v127_v7  ;;  %417 = vmatpush3.msra.mxu1 %v127_v7 }
  0x1d   :  { %383 = vmatprep.subr.mxu0 %v473_v0  ;;  %418 = vmatprep.subr.mxu1 %v473_v0 }
  0x1e   :  { %384 = vmatpush3.msra.mxu0 %v126_v8  ;;  %419 = vmatpush3.msra.mxu1 %v126_v8 }
  0x1f   :  { %385 = vmatprep.subr.mxu0 %v473_v0  ;;  %420 = vmatprep.subr.mxu1 %v473_v0 }
  0x20   :  { %386 = vmatpush3.msra.mxu0 %v125_v9  ;;  %421 = vmatpush3.msra.mxu1 %v125_v9 }
  0x21   :  { %387 = vmatprep.subr.mxu0 %v473_v0  ;;  %422 = vmatprep.subr.mxu1 %v473_v0 }
  0x22   :  { %388 = vmatpush3.msra.mxu0 %v124_v10  ;;  %423 = vmatpush3.msra.mxu1 %v124_v10 }
  0x23   :  { %389 = vmatprep.subr.mxu0 %v473_v0  ;;  %424 = vmatprep.subr.mxu1 %v473_v0 }
  0x24   :  { %390 = vmatpush3.msra.mxu0 %v123_v14  ;;  %425 = vmatpush3.msra.mxu1 %v123_v14 }
  0x25   :  { %391 = vmatprep.subr.mxu0 %v473_v0  ;;  %426 = vmatprep.subr.mxu1 %v473_v0 }
  0x26   :  { %392 = vmatpush3.msra.mxu0 %v122_v15  ;;  %427 = vmatpush3.msra.mxu1 %v122_v15 }
  0x27   :  { %393 = vmatprep.subr.mxu0 %v473_v0  ;;  %428 = vmatprep.subr.mxu1 %v473_v0 }
  0x28   :  { %394 = vmatpush3.msra.mxu0 %v121_v18  ;;  %429 = vmatpush3.msra.mxu1 %v121_v18 }
  0x29   :  { %395 = vmatprep.subr.mxu0 %v473_v0  ;;  %430 = vmatprep.subr.mxu1 %v473_v0 }
  0x2a   :  { %396 = vmatpush3.msra.mxu0 %v120_v19  ;;  %431 = vmatpush3.msra.mxu1 %v120_v19 }
  0x2b   :  { %397 = vmatprep.subr.mxu0 %v473_v0  ;;  %432 = vmatprep.subr.mxu1 %v473_v0 }
  0x2c   :  { %398 = vmatpush3.msra.mxu0 %v119_v22  ;;  %433 = vmatpush3.msra.mxu1 %v119_v22 }
  0x2d   :  { %399 = vmatprep.subr.mxu0 %v473_v0  ;;  %434 = vmatprep.subr.mxu1 %v473_v0 }
  0x2e   :  { %400 = vmatpush3.msra.mxu0 %v118_v23  ;;  %435 = vmatpush3.msra.mxu1 %v118_v23 }
  0x2f   :  { %402 = vmatmul.mubr.f32.vlgmr.msra.gmra.mxu0 %v139_v24  ;;  %437 = vmatmul.mubr.f32.vlgmr.msra.gmra.mxu1 %v219_v25 }
  0xef   :  { %v206_v26 = vpop.f32.mrf.mxu0  ;;  %v286_v27 = vpop.f32.mrf.mxu1 }
  0xf0   :  { %444 = vrsqrt.f32 %v206_v26  ;;  %vm212_vm2 = vcmp.eq.f32.partialorder %v206_v26, inf  ;;  %v215_v34 = vand.u32 2147483648, %v206_v26  ;;  %vm214_vm3 = vcmp.eq.f32.partialorder %v206_v26, 0.0 }
  0xf1   :  { %446 = vrsqrt.f32 %v286_v27  ;;  %v403_v28 = vpop.f32.mrf.mxu0  ;;  %v438_v29 = vpop.f32.mrf.mxu1  ;;  %vm292_vm4 = vcmp.eq.f32.partialorder %v286_v27, inf  ;;  %v295_v37 = vand.u32 2147483648, %v286_v27  ;;  %vm294_vm5 = vcmp.eq.f32.partialorder %v286_v27, 0.0 }
  0xfd   :  { %v445_v30 = vpop.eup %444 }
  0xfe   :  { %v447_v31 = vpop.eup %446  ;;  %v211_v32 = vmul.f32 %v445_v30, %v206_v26 }
  0xff   :  { %v291_v35 = vmul.f32 %v447_v31, %v286_v27 }
 0x100   :  { %v213_v36 = vsel %vm212_vm2, %v206_v26, %v211_v32 }
 0x101   :  { %v216_v38 = vsel %vm214_vm3, %v215_v34, %v213_v36  ;;  %v293_v39 = vsel %vm292_vm4, %v286_v27, %v291_v35 }
 0x102   :  { %v296_v40 = vsel %vm294_vm5, %v295_v37, %v293_v39 }
 0x103   :  { %v297_v42 = vsub.f32 %v216_v38, %v296_v40 }
 0x105   :  { %v298_v43 = vadd.f32 1.0, %v297_v42 }
 0x107   :  { %v299_v44 = vmax.f32 %v298_v43, 0.0 }
 0x109   :  { %v308_v46 = vsel %vm307_vm6, %v299_v44, 0.0 }
 0x10a   :  { %v309_v47 = vadd.f32 %v308_v46, %v306_v45 }
 0x10c   :  { %311 = vst.msk [vmem:[%s562_s4] sm:$0xf] %vm116_vm1, %v309_v47 }
 0x10d   :  { %316 = vsyncpa [#allocation3], 1 }

</bundles_post_ra>
